<compile_context>
chip_gen: v5e
topology: v5e:2x2
jax: 0.10.0
libtpu: 0.0.40
codegen_flags: <defaults>
</compile_context>

<pallas_src>
import numpy as np
import jax
import jax.numpy as jnp
from jax.experimental import pallas as pl
from jax.experimental.pallas import tpu as pltpu


# --------------------------------------------------------------------------
# Device / tiling helpers
# --------------------------------------------------------------------------
def _device_kind():
    try:
        return jax.devices()[0].device_kind.lower()
    except Exception:
        return ""


def _is_v7x():
    return "v7" in _device_kind()


def _target_block_bytes():
    """Per-generation x-block byte budget (amortize ~0.35us/step at that
    generation's HBM bandwidth while respecting its VMEM)."""
    k = _device_kind()
    if "v7" in k:
        return 8 << 20   # 3.2 TB/s per TC, 64 MiB physical VMEM
    if "v6" in k:
        return 4 << 20   # 1.4 TB/s, 128 MiB VMEM
    return 2 << 20       # v5e / unknown: already >85% of roofline here


def _round_up(n, m):
    return ((n + m - 1) // m) * m


def _pick_tile(total, align, max_tile, want_split=False):
    """Largest multiple-of-`align` divisor of `total` that is <= max_tile.
    `total` must already be a multiple of `align` (we pad beforehand).
    want_split (v7x only): prefer a divisor leaving >= 2 grid steps so the
    two TensorCores each stream a disjoint row range."""
    cap = max(align, min(total, max_tile))
    cands = [t for t in range(align, cap + 1, align) if total % t == 0]
    if not cands:
        cands = [align]
    if want_split:
        multi = [t for t in cands if total // t >= 2]
        if multi:
            return max(multi)
    return max(cands)


# --------------------------------------------------------------------------
# Pallas kernels (per-row broadcast over a lane-dense (rows, lanes) view)
# --------------------------------------------------------------------------
def _affine_kernel(x_ref, g_ref, b_ref, o_ref):
    # x: (rt, lt); g/b: (rt, 1) f32, broadcast along lanes.  Math in f32.
    xv = x_ref[...].astype(jnp.float32)
    o_ref[...] = ((1.0 + g_ref[...]) * xv + b_ref[...]).astype(o_ref.dtype)


def _add_kernel(x_ref, d_ref, o_ref):
    xv = x_ref[...].astype(jnp.float32)
    o_ref[...] = (xv + d_ref[...]).astype(o_ref.dtype)


def _apply_rowwise(kernel_fn, x2d, *row_vecs, donate_x=False):
    """Apply a per-row broadcast op: x2d (M, L), row_vecs each (M, 1) f32."""
    M, L = x2d.shape
    itemsize = jnp.dtype(x2d.dtype).itemsize
    row_align = max(8, 32 // itemsize)      # 8 f32 / 16 bf16 / 32 int8
    lane_align = 128

    # Pad to aligned extents in the wrapper (only when needed) so every block
    # is lane-dense (unmasked vst) and no single giant unaligned block is
    # ever emitted.  Padded rows/lanes are sliced off afterwards.
    M_pad = _round_up(M, row_align)
    L_pad = _round_up(L, lane_align)
    padded = (M_pad, L_pad) != (M, L)
    if padded:
        x2d = jnp.pad(x2d, ((0, M_pad - M), (0, L_pad - L)))
        row_vecs = tuple(jnp.pad(v, ((0, M_pad - M), (0, 0))) for v in row_vecs)

    budget = _target_block_bytes()
    # Lanes: keep the full (padded) width unless even a minimum-height block
    # would blow the budget; lane tiles stay multiples of 128.
    max_lt = max(lane_align,
                 (budget // (row_align * itemsize)) // lane_align * lane_align)
    lt = _pick_tile(L_pad, lane_align, max_lt)
    # Rows: fill the remaining budget.  On v7x prefer >=2 row blocks so the
    # "parallel" row axis shards across both TensorCores.
    max_rt = max(row_align, (budget // (lt * itemsize)) // row_align * row_align)
    rt = _pick_tile(M_pad, row_align, max_rt, want_split=_is_v7x())

    grid = (M_pad // rt, L_pad // lt)
    x_spec = pl.BlockSpec((rt, lt), lambda i, j: (i, j))
    # Row-vector block index is constant along the fast grid axis j, so it is
    # not re-DMA'd between consecutive steps.
    row_spec = pl.BlockSpec((rt, 1), lambda i, j: (i, 0))

    out = pl.pallas_call(
        kernel_fn,
        out_shape=jax.ShapeDtypeStruct((M_pad, L_pad), x2d.dtype),
        grid=grid,
        in_specs=[x_spec] + [row_spec] * len(row_vecs),
        out_specs=x_spec,
        compiler_params=pltpu.CompilerParams(
            # row axis parallel (megacore / v7x dual-TC), lane axis arbitrary
            dimension_semantics=("parallel", "arbitrary"),
            # explicit, generation-safe scoped-VMEM limit: fits 2x double-
            # buffered 8 MiB blocks, leaves headroom on v7x's 64 MiB VMEM,
            # and lifts v5e's 16 MiB default.
            vmem_limit_bytes=48 * 1024 * 1024),
        input_output_aliases=({0: 0} if donate_x else {}),
    )(x2d, *row_vecs)

    if padded:
        out = out[:M, :L]
    return out


# --------------------------------------------------------------------------
# FeatureWiseAffine forward (Pallas path)
# --------------------------------------------------------------------------
def feature_wise_affine_forward(x, noise_embed, params, use_affine_level=False,
                                donate_x=False):
    """x: (B, C, H, W); noise_embed: (B, Cin).
    params: w (Cin, C*(1+use_affine_level)), b (C*(1+use_affine_level),)."""
    B, C, H, W = x.shape
    # Tiny noise projection: plain XLA dot in f32 (a few hundred FLOPs; a
    # dedicated MXU pallas_call only adds launch overhead and tile padding).
    noise = (jnp.dot(noise_embed.astype(jnp.float32),
                     params["w"].astype(jnp.float32),
                     preferred_element_type=jnp.float32)
             + params["b"].astype(jnp.float32))            # (B, N) f32
    # Lane-dense view: channels fold into rows, spatial pixels are the lanes.
    x2d = x.reshape(B * C, H * W)
    if use_affine_level:
        gamma = noise[:, :C].reshape(B * C, 1)   # contiguous slices/reshapes
        beta = noise[:, C:].reshape(B * C, 1)
        out2d = _apply_rowwise(_affine_kernel, x2d, gamma, beta,
                               donate_x=donate_x)
    else:
        delta = noise.reshape(B * C, 1)
        out2d = _apply_rowwise(_add_kernel, x2d, delta, donate_x=donate_x)
    return out2d.reshape(B, C, H, W)


# --------------------------------------------------------------------------
# Pure-JAX reference for verification
# --------------------------------------------------------------------------
def reference_forward(x, noise_embed, params, use_affine_level=False):
    B, C = x.shape[0], x.shape[1]
    noise = (noise_embed.astype(jnp.float32) @ params["w"].astype(jnp.float32)
             + params["b"].astype(jnp.float32))
    xf = x.astype(jnp.float32)
    if use_affine_level:
        gb = noise.reshape(B, -1, 1, 1)
        gamma, beta = gb[:, :C], gb[:, C:]
        return (1.0 + gamma) * xf + beta
    return xf + noise.reshape(B, -1, 1, 1)


# --------------------------------------------------------------------------
if __name__ == "__main__":
    B, C, H, W = 2, 4, 16, 16      # x: (batch, out_channels, spatial, spatial)
    Cin = 32                       # noise-embedding width (in_channels)

    key = jax.random.PRNGKey(0)
    ks = jax.random.split(key, 6)
    x = jax.random.normal(ks[0], (B, C, H, W), jnp.float32)
    noise_embed = jax.random.normal(ks[1], (B, Cin), jnp.float32)

    # use_affine_level = False  -> Linear(Cin, C)
    params_add = {
        "w": jax.random.normal(ks[2], (Cin, C), jnp.float32) * 0.1,
        "b": jax.random.normal(ks[3], (C,), jnp.float32) * 0.1,
    }
    # use_affine_level = True   -> Linear(Cin, 2*C)
    params_aff = {
        "w": jax.random.normal(ks[4], (Cin, 2 * C), jnp.float32) * 0.1,
        "b": jax.random.normal(ks[5], (2 * C,), jnp.float32) * 0.1,
    }

    out_add = feature_wise_affine_forward(x, noise_embed, params_add,
                                          use_affine_level=False)
    out_aff = feature_wise_affine_forward(x, noise_embed, params_aff,
                                          use_affine_level=True)
    out_add, out_aff = jax.block_until_ready((out_add, out_aff))

    ref_add = reference_forward(x, noise_embed, params_add, use_affine_level=False)
    ref_aff = reference_forward(x, noise_embed, params_aff, use_affine_level=True)

    np.testing.assert_allclose(np.asarray(out_add), np.asarray(ref_add),
                               rtol=1e-4, atol=1e-4)
    np.testing.assert_allclose(np.asarray(out_aff), np.asarray(ref_aff),
                               rtol=1e-4, atol=1e-4)

    # bf16 + non-128-multiple spatial extent: exercises the dtype-aware
    # sublane alignment and the lane/row padding path (f32 math in-kernel).
    x_bf = jax.random.normal(ks[0], (B, C, 10, 10), jnp.float32)
    out_bf = feature_wise_affine_forward(x_bf.astype(jnp.bfloat16),
                                         noise_embed.astype(jnp.bfloat16),
                                         params_aff, use_affine_level=True)
    out_bf = jax.block_until_ready(out_bf)
    ref_bf = reference_forward(x_bf, noise_embed, params_aff,
                               use_affine_level=True)
    np.testing.assert_allclose(np.asarray(out_bf, dtype=np.float32),
                               np.asarray(ref_bf), rtol=3e-2, atol=3e-2)

    print("KERNEL_OK")
</pallas_src>

<mosaic_0001>
module attributes {stable_mosaic.version = 11 : i64} {
  func.func @_add_kernel(%arg0: i32, %arg1: i32, %arg2: memref<8x256xf32, #tpu.memory_space<vmem>>, %arg3: memref<8x1xf32, #tpu.memory_space<vmem>>, %arg4: memref<8x256xf32, #tpu.memory_space<vmem>>) attributes {dimension_semantics = [#tpu.dimension_semantics<parallel>, #tpu.dimension_semantics<arbitrary>], iteration_bounds = array<i64: 1, 1>, scalar_prefetch = 0 : i64, scratch_operands = 0 : i64, tpu.core_type = #tpu.core_type<tc>, window_params = [{transform_indices = @transform_0, window_bounds = array<i64: 8, 256>}, {transform_indices = @transform_1, window_bounds = array<i64: 8, 1>}, {transform_indices = @transform_2, window_bounds = array<i64: 8, 256>}]} {
    %c0 = arith.constant 0 : index
    %c0_0 = arith.constant 0 : index
    %0 = vector.load %arg2[%c0, %c0_0] : memref<8x256xf32, #tpu.memory_space<vmem>>, vector<8x256xf32>
    %c0_1 = arith.constant 0 : index
    %c0_2 = arith.constant 0 : index
    %1 = vector.load %arg3[%c0_1, %c0_2] : memref<8x1xf32, #tpu.memory_space<vmem>>, vector<8x1xf32>
    %2 = vector.broadcast %1 : vector<8x1xf32> to vector<8x256xf32>
    %3 = arith.addf %0, %2 : vector<8x256xf32>
    %c0_3 = arith.constant 0 : index
    %c0_4 = arith.constant 0 : index
    %4 = vector.load %arg4[%c0_3, %c0_4] : memref<8x256xf32, #tpu.memory_space<vmem>>, vector<8x256xf32>
    tpu.vector_store %arg4[%c0_3, %c0_4], %3 {strides = array<i32>} : memref<8x256xf32, #tpu.memory_space<vmem>>, vector<8x256xf32>,
    return
  }
  func.func @transform_0(%arg0: i32, %arg1: i32) -> (i32, i32) {
    %c0_i32 = arith.constant 0 : i32
    return %arg0, %arg1 : i32, i32
  }
  func.func @transform_1(%arg0: i32, %arg1: i32) -> (i32, i32) {
    %c0_i32 = arith.constant 0 : i32
    %c0_i32_0 = arith.constant 0 : i32
    return %arg0, %c0_i32 : i32, i32
  }
  func.func @transform_2(%arg0: i32, %arg1: i32) -> (i32, i32) {
    %c0_i32 = arith.constant 0 : i32
    return %arg0, %arg1 : i32, i32
  }
}

</mosaic_0001>

<bundles_post_ra>
// kernel: tpu_custom_call.1
= control target key start
LH: loop header
LB: loop body
LE: loop exit
PB: predicated region body
PF: predicated region fallthrough
CT: control target
= control target key end

     0   :  { %7 = vsyncpa [#allocation3], 0  ;;  %s138_s0 = inlined_call_operand.hbm [shape: f32[8,256], index: 0, kind: input, shape index: {}]   ;;  %s139_s1 = inlined_call_operand.vmem [shape: f32[8,1], index: 1, kind: input, shape index: {}]   ;;  %s140_s2 = inlined_call_operand.hbm [shape: f32[8,256], index: 2, kind: output, shape index: {}]  }
   0x1   :  { %8 = vsyncpa [#allocation4], 0  ;;  %s14_s11 = sshll.u32 %s138_s0, 4  ;;  %s111_s12 = smov [#allocation2]   ;;  %s15_s11 = int_to_ptr.hbm [resolvable:$true] %s14_s11 }
   0x2   :  { %s16_s13 = sshll.u32 %s111_s12, 4  ;;  %s17_s13 = int_to_ptr.vmem [resolvable:$true] %s16_s13 }
   0x3   :  { %19 = dma.hbm_to_vmem [thread:$0]  %s15_s11, 256, %s17_s13, [#allocation3]  }
   0x4   :  { %107 = dma.done.wait [#allocation3], 256  }
   0x5   :  { %108 = vsyncadd [#allocation3], 4294967040  ;;  %v112_v0 = vmov 0   ;;  %v28_v1 = vld [vmem:[%s139_s1] sm:$0xff]  ;;  %v27_v3 = vld [vmem:[#allocation2 + $0x8] sm:$0xff]  ;;  %s113_s16 = smov [#allocation5]  }
   0x6   :  { %58 = vset.pattern.permute.xlu0 %v112_v0  ;;  %v26_v2 = vld [vmem:[#allocation2] sm:$0xff]  ;;  %s43_s17 = sshll.u32 %s113_s16, 4  ;;  %s45_s19 = sshll.u32 %s140_s2, 4  ;;  %s44_s17 = int_to_ptr.vmem [resolvable:$true] %s43_s17  ;;  %s46_s19 = int_to_ptr.hbm [resolvable:$true] %s45_s19 }
   0x7   :  { %31 = vperm.xlu0 %58, %v28_v1  }
  0x79   :  { %v32_v4 = vpop.permute.xlu0 %31 }
  0x7a   :  { %v34_v5 = vadd.f32 %v32_v4, %v26_v2  ;;  %v35_v6 = vadd.f32 %v32_v4, %v27_v3 }
  0x7c   :  { %36 = vst [vmem:[#allocation5] sm:$0xff] %v34_v5 }
  0x7d   :  { %37 = vst [vmem:[#allocation5 + $0x8] sm:$0xff] %v35_v6 }
  0x7e   :  { %48 = dma.vmem_to_hbm [thread:$0]  %s44_s17, 256, %s46_s19, [#allocation4]  }
  0x7f   :  { %109 = dma.done.wait [#allocation4], 256  }
  0x80   :  { %110 = vsyncadd [#allocation4], 4294967040 }
  0x81   :  { %53 = vsyncpa [#allocation3], 1 }
  0x82   :  { %54 = vsyncpa [#allocation4], 1 }

</bundles_post_ra>
